<compile_context>
chip_gen: v6e
topology: v6e:2x2x1
jax: 0.10.0
libtpu: 0.0.40
codegen_flags: <defaults>
</compile_context>

<pallas_src>
import jax
import jax.numpy as jnp
from jax.experimental import pallas as pl
from jax.experimental.pallas import tpu as pltpu

NUM_LAYERS = 2        # matches `num_layers = 2` in the reference script
SUB_ROWS = 128        # in-kernel sub-tile (bounds vreg live ranges)
NEG_INF = -1e30       # finite "-inf" baked into padded output-bias lanes


def _select_tile_b(batch):
    """Pick the batch tile.

    * B <= 8: 8-row latency fast path (min f32 sublane tile).
    * B <= 256: split into 2 grid steps so v7x's second TensorCore has work.
    * larger B: multiples of 128 capped at 512, keeping >= ~4 grid steps.
    """
    if batch <= 8:
        return 8
    if batch <= 256:
        return max(8, ((pl.cdiv(batch, 2) + 7) // 8) * 8)
    n128 = pl.cdiv(batch, SUB_ROWS)
    sub_per_tile = max(1, min(4, n128 // 4))
    return SUB_ROWS * sub_per_tile


def pi_net_kernel(x_ref, w_in_ref, b_in_ref, w_hid_ref, b_hid_ref,
                  w_out_ref, b_out_ref, o_ref):
    # x_ref:     (TILE_B, s_dim)
    # w_in_ref:  (s_dim, h_dim),             b_in_ref:  (1, h_dim)
    # w_hid_ref: (NUM_LAYERS, h_dim, h_dim), b_hid_ref: (NUM_LAYERS, 1, h_dim)
    # w_out_ref: (h_dim, a_pad),             b_out_ref: (1, a_pad)  (pad lanes = NEG_INF)
    # o_ref:     (TILE_B, a_dim)             <- narrow, un-padded output
    tile_b, s_dim = x_ref.shape
    n_hidden = w_hid_ref.shape[0]
    a_dim = o_ref.shape[1]
    sub = min(tile_b, SUB_ROWS)
    n_sub = tile_b // sub

    def forward(x):
        # fc_in as VPU FMAs: K = s_dim is tiny (2); an MXU matmul would waste
        # the contraction dimension and add fill/drain latency.
        h = b_in_ref[...]
        for k in range(s_dim):                       # static unroll
            h = h + x[:, k:k + 1] * w_in_ref[k:k + 1, :]
        h = jnp.maximum(h, 0.0)

        # hidden layers on the MXU (static unroll over NUM_LAYERS)
        for i in range(n_hidden):
            h = jnp.dot(h, w_hid_ref[i],
                        preferred_element_type=jnp.float32) + b_hid_ref[i]
            h = jnp.maximum(h, 0.0)

        # fc_out: padded columns have zero weights and NEG_INF bias -> exp()=0,
        # so the 128-lane softmax is exact on the real lanes.
        logits = jnp.dot(h, w_out_ref[...],
                         preferred_element_type=jnp.float32) + b_out_ref[...]
        m = jnp.max(logits, axis=-1, keepdims=True)
        e = jnp.exp(logits - m)
        denom = jnp.sum(e, axis=-1, keepdims=True)
        # exact divide: the kernel is overhead/DMA-bound, so this is free.
        return e / denom

    if n_sub == 1:
        probs = forward(x_ref[...].astype(jnp.float32))
        o_ref[...] = probs[:, :a_dim]
    else:
        # process in 128-row sub-tiles to bound vreg live ranges at TILE_B>=256
        def body(step, carry):
            row = pl.multiple_of(step * sub, sub)
            probs = forward(x_ref[pl.ds(row, sub), :].astype(jnp.float32))
            o_ref[pl.ds(row, sub), :] = probs[:, :a_dim]
            return carry

        jax.lax.fori_loop(0, n_sub, body, 0, unroll=True)


def pi_net_apply(states, params, a_dim):
    """states: (B, s_dim) f32 -> (B, a_dim) per-row action probabilities."""
    w_in, b_in, w_hid, b_hid, w_out_p, b_out_p = params
    B, s_dim = states.shape
    h_dim = w_in.shape[1]
    a_pad = w_out_p.shape[1]
    n_layers = w_hid.shape[0]

    tile_b = _select_tile_b(B)
    b_padded = pl.cdiv(B, tile_b) * tile_b
    if b_padded != B:
        states = jnp.pad(states, ((0, b_padded - B), (0, 0)))
    states = states.astype(jnp.float32)

    grid = (b_padded // tile_b,)

    out = pl.pallas_call(
        pi_net_kernel,
        out_shape=jax.ShapeDtypeStruct((b_padded, a_dim), jnp.float32),
        grid_spec=pltpu.PrefetchScalarGridSpec(
            num_scalar_prefetch=0,
            grid=grid,
            in_specs=[
                # activations stream with the grid
                pl.BlockSpec((tile_b, s_dim), lambda b: (b, 0)),
                # weights/biases: constant index_map -> fetched once, VMEM-resident
                pl.BlockSpec((s_dim, h_dim), lambda b: (0, 0)),
                pl.BlockSpec((1, h_dim), lambda b: (0, 0)),
                pl.BlockSpec((n_layers, h_dim, h_dim), lambda b: (0, 0, 0)),
                pl.BlockSpec((n_layers, 1, h_dim), lambda b: (0, 0, 0)),
                pl.BlockSpec((h_dim, a_pad), lambda b: (0, 0)),
                pl.BlockSpec((1, a_pad), lambda b: (0, 0)),
            ],
            # narrow output block: last dim == full array dim (legal), so only
            # the real a_dim lanes ever hit HBM.
            out_specs=pl.BlockSpec((tile_b, a_dim), lambda b: (b, 0)),
        ),
        compiler_params=pltpu.CompilerParams(
            dimension_semantics=("parallel",),   # shards batch across TCs on v7x
        ),
    )(states, w_in, b_in, w_hid, b_hid, w_out_p, b_out_p)

    if b_padded != B:
        out = out[:B]
    return out


def pi_net_forward(state, params, a_dim):
    """Single-state forward matching the PyTorch module: (s_dim,) -> (a_dim,)."""
    return pi_net_apply(state.reshape(1, -1), params, a_dim)[0]


def init_params(key, s_dim, h_dim, a_dim, num_layers):
    """nn.Linear-style init (U(-1/sqrt(fan_in), 1/sqrt(fan_in))).

    Weights are stored as (in_features, out_features) (PyTorch weight
    transposed) so the kernel computes x @ W + b.  The output layer is
    lane-padded to a multiple of 128 *for the in-kernel matmul/softmax only*:
    padded weight columns are zero and padded bias lanes are NEG_INF so the
    softmax ignores them exactly; the kernel stores only the real a_dim lanes.
    """
    def linear(key, fan_in, fan_out):
        kw, kb = jax.random.split(key)
        bound = 1.0 / jnp.sqrt(jnp.float32(fan_in))
        w = jax.random.uniform(kw, (fan_in, fan_out), jnp.float32, -bound, bound)
        b = jax.random.uniform(kb, (1, fan_out), jnp.float32, -bound, bound)
        return w, b

    keys = jax.random.split(key, 2 + num_layers)
    w_in, b_in = linear(keys[0], s_dim, h_dim)
    w_out, b_out = linear(keys[1], h_dim, a_dim)

    w_hid_list, b_hid_list = [], []
    for i in range(num_layers):
        w, b = linear(keys[2 + i], h_dim, h_dim)
        w_hid_list.append(w)
        b_hid_list.append(b)
    w_hid = jnp.stack(w_hid_list, axis=0)            # (num_layers, h_dim, h_dim)
    b_hid = jnp.stack(b_hid_list, axis=0)            # (num_layers, 1, h_dim)

    # lane-pad the output layer to a multiple of 128 (in-kernel layout only)
    a_pad = pl.cdiv(a_dim, 128) * 128
    w_out_p = jnp.zeros((h_dim, a_pad), jnp.float32).at[:, :a_dim].set(w_out)
    b_out_p = jnp.full((1, a_pad), NEG_INF, jnp.float32).at[:, :a_dim].set(b_out)

    return (w_in, b_in, w_hid, b_hid, w_out_p, b_out_p)


def pi_net_reference(states, params, a_dim):
    """Pure-JAX reference of the PyTorch forward pass (batched over rows)."""
    w_in, b_in, w_hid, b_hid, w_out_p, b_out_p = params
    w_out = w_out_p[:, :a_dim]
    b_out = b_out_p[0, :a_dim]
    hi = jax.lax.Precision.HIGHEST
    h = jnp.maximum(jnp.dot(states, w_in, precision=hi) + b_in[0], 0.0)
    for i in range(w_hid.shape[0]):
        h = jnp.maximum(jnp.dot(h, w_hid[i], precision=hi) + b_hid[i, 0], 0.0)
    logits = jnp.dot(h, w_out, precision=hi) + b_out
    return jax.nn.softmax(logits, axis=-1)


if __name__ == "__main__":
    # Mountain-car-like dimensions: state dim 2, hidden 32, 3 actions.
    s_dim, h_dim, a_dim = 2, 32, 3

    key = jax.random.PRNGKey(0)
    k_params, k_state = jax.random.split(key)
    params = init_params(k_params, s_dim, h_dim, a_dim, NUM_LAYERS)

    # --- batched path: B=256 -> tile 128, 2 grid steps --------------------
    B = 256
    states = jax.random.normal(k_state, (B, s_dim), jnp.float32)
    probs = jax.block_until_ready(pi_net_apply(states, params, a_dim))
    ref = pi_net_reference(states, params, a_dim)
    assert probs.shape == (B, a_dim)
    assert jnp.allclose(jnp.sum(probs, axis=-1), 1.0, atol=1e-5)
    assert jnp.allclose(probs, ref, atol=5e-4, rtol=5e-4)

    # --- larger ragged batch: B=1000 -> tile 256, 4 steps, 2 sub-tiles/step
    B2 = 1000
    states2 = jax.random.normal(jax.random.PRNGKey(1), (B2, s_dim), jnp.float32)
    probs2 = jax.block_until_ready(pi_net_apply(states2, params, a_dim))
    ref2 = pi_net_reference(states2, params, a_dim)
    assert probs2.shape == (B2, a_dim)
    assert jnp.allclose(jnp.sum(probs2, axis=-1), 1.0, atol=1e-5)
    assert jnp.allclose(probs2, ref2, atol=5e-4, rtol=5e-4)

    # --- single-state fast path (== the PyTorch module's forward) ---------
    p1 = jax.block_until_ready(pi_net_forward(states[0], params, a_dim))
    assert p1.shape == (a_dim,)
    assert jnp.allclose(p1, ref[0], atol=5e-4, rtol=5e-4)

    print("KERNEL_OK")
</pallas_src>

<mosaic_0001>
module attributes {stable_mosaic.version = 11 : i64} {
  func.func @pi_net_kernel(%arg0: i32, %arg1: memref<128x2xf32, #tpu.memory_space<vmem>>, %arg2: memref<2x32xf32, #tpu.memory_space<vmem>>, %arg3: memref<1x32xf32, #tpu.memory_space<vmem>>, %arg4: memref<2x32x32xf32, #tpu.memory_space<vmem>>, %arg5: memref<2x1x32xf32, #tpu.memory_space<vmem>>, %arg6: memref<32x128xf32, #tpu.memory_space<vmem>>, %arg7: memref<1x128xf32, #tpu.memory_space<vmem>>, %arg8: memref<128x3xf32, #tpu.memory_space<vmem>>) attributes {dimension_semantics = [#tpu.dimension_semantics<parallel>], iteration_bounds = array<i64: 2>, scalar_prefetch = 0 : i64, scratch_operands = 0 : i64, tpu.core_type = #tpu.core_type<tc>, window_params = [{transform_indices = @transform_0, window_bounds = array<i64: 128, 2>}, {pipeline_mode = #tpu.pipeline_mode<synchronous>, transform_indices = @transform_1, window_bounds = array<i64: 2, 32>}, {pipeline_mode = #tpu.pipeline_mode<synchronous>, transform_indices = @transform_2, window_bounds = array<i64: 1, 32>}, {pipeline_mode = #tpu.pipeline_mode<synchronous>, transform_indices = @transform_3, window_bounds = array<i64: 2, 32, 32>}, {pipeline_mode = #tpu.pipeline_mode<synchronous>, transform_indices = @transform_4, window_bounds = array<i64: 2, 1, 32>}, {pipeline_mode = #tpu.pipeline_mode<synchronous>, transform_indices = @transform_5, window_bounds = array<i64: 32, 128>}, {pipeline_mode = #tpu.pipeline_mode<synchronous>, transform_indices = @transform_6, window_bounds = array<i64: 1, 128>}, {transform_indices = @transform_7, window_bounds = array<i64: 128, 3>}]} {
    %c0 = arith.constant 0 : index
    %c0_0 = arith.constant 0 : index
    %0 = vector.load %arg1[%c0, %c0_0] : memref<128x2xf32, #tpu.memory_space<vmem>>, vector<128x2xf32>
    %c0_1 = arith.constant 0 : index
    %c0_2 = arith.constant 0 : index
    %1 = vector.load %arg3[%c0_1, %c0_2] : memref<1x32xf32, #tpu.memory_space<vmem>>, vector<1x32xf32>
    %2 = vector.extract_strided_slice %0 {offsets = [0, 0], sizes = [128, 1], strides = [1, 1]} : vector<128x2xf32> to vector<128x1xf32>
    %c0_3 = arith.constant 0 : index
    %c0_4 = arith.constant 0 : index
    %3 = vector.load %arg2[%c0_3, %c0_4] : memref<2x32xf32, #tpu.memory_space<vmem>>, vector<1x32xf32>
    %4 = vector.broadcast %2 : vector<128x1xf32> to vector<128x32xf32>
    %5 = vector.broadcast %3 : vector<1x32xf32> to vector<128x32xf32>
    %6 = arith.mulf %4, %5 : vector<128x32xf32>
    %7 = vector.broadcast %1 : vector<1x32xf32> to vector<128x32xf32>
    %8 = arith.addf %7, %6 : vector<128x32xf32>
    %9 = vector.extract_strided_slice %0 {offsets = [0, 1], sizes = [128, 1], strides = [1, 1]} : vector<128x2xf32> to vector<128x1xf32>
    %c1 = arith.constant 1 : index
    %c0_5 = arith.constant 0 : index
    %10 = vector.load %arg2[%c1, %c0_5] : memref<2x32xf32, #tpu.memory_space<vmem>>, vector<1x32xf32>
    %11 = vector.broadcast %9 : vector<128x1xf32> to vector<128x32xf32>
    %12 = vector.broadcast %10 : vector<1x32xf32> to vector<128x32xf32>
    %13 = arith.mulf %11, %12 : vector<128x32xf32>
    %14 = arith.addf %8, %13 : vector<128x32xf32>
    %cst = arith.constant 0.000000e+00 : f32
    %15 = vector.broadcast %cst : f32 to vector<128x32xf32>
    %16 = arith.maximumf %14, %15 : vector<128x32xf32>
    %c0_6 = arith.constant 0 : index
    %c0_7 = arith.constant 0 : index
    %c0_8 = arith.constant 0 : index
    %17 = vector.load %arg4[%c0_6, %c0_7, %c0_8] : memref<2x32x32xf32, #tpu.memory_space<vmem>>, vector<1x32x32xf32>
    %18 = vector.shape_cast %17 : vector<1x32x32xf32> to vector<32x32xf32>
    %cst_9 = arith.constant dense<0.000000e+00> : vector<128x32xf32>
    %19 = tpu.matmul %16, %18, %cst_9 {dimension_numbers = #tpu.dot_dimension_numbers<[1], [0], [0], [1], [0, 0, 1, 1], [], []>} : vector<128x32xf32>, vector<32x32xf32>, vector<128x32xf32> -> vector<128x32xf32>
    %c0_10 = arith.constant 0 : index
    %c0_11 = arith.constant 0 : index
    %c0_12 = arith.constant 0 : index
    %20 = vector.load %arg5[%c0_10, %c0_11, %c0_12] : memref<2x1x32xf32, #tpu.memory_space<vmem>>, vector<1x1x32xf32>
    %21 = vector.shape_cast %20 : vector<1x1x32xf32> to vector<1x32xf32>
    %22 = vector.broadcast %21 : vector<1x32xf32> to vector<128x32xf32>
    %23 = arith.addf %19, %22 : vector<128x32xf32>
    %cst_13 = arith.constant 0.000000e+00 : f32
    %24 = vector.broadcast %cst_13 : f32 to vector<128x32xf32>
    %25 = arith.maximumf %23, %24 : vector<128x32xf32>
    %c1_14 = arith.constant 1 : index
    %c0_15 = arith.constant 0 : index
    %c0_16 = arith.constant 0 : index
    %26 = vector.load %arg4[%c1_14, %c0_15, %c0_16] : memref<2x32x32xf32, #tpu.memory_space<vmem>>, vector<1x32x32xf32>
    %27 = vector.shape_cast %26 : vector<1x32x32xf32> to vector<32x32xf32>
    %cst_17 = arith.constant dense<0.000000e+00> : vector<128x32xf32>
    %28 = tpu.matmul %25, %27, %cst_17 {dimension_numbers = #tpu.dot_dimension_numbers<[1], [0], [0], [1], [0, 0, 1, 1], [], []>} : vector<128x32xf32>, vector<32x32xf32>, vector<128x32xf32> -> vector<128x32xf32>
    %c1_18 = arith.constant 1 : index
    %c0_19 = arith.constant 0 : index
    %c0_20 = arith.constant 0 : index
    %29 = vector.load %arg5[%c1_18, %c0_19, %c0_20] : memref<2x1x32xf32, #tpu.memory_space<vmem>>, vector<1x1x32xf32>
    %30 = vector.shape_cast %29 : vector<1x1x32xf32> to vector<1x32xf32>
    %31 = vector.broadcast %30 : vector<1x32xf32> to vector<128x32xf32>
    %32 = arith.addf %28, %31 : vector<128x32xf32>
    %cst_21 = arith.constant 0.000000e+00 : f32
    %33 = vector.broadcast %cst_21 : f32 to vector<128x32xf32>
    %34 = arith.maximumf %32, %33 : vector<128x32xf32>
    %c0_22 = arith.constant 0 : index
    %c0_23 = arith.constant 0 : index
    %35 = vector.load %arg6[%c0_22, %c0_23] : memref<32x128xf32, #tpu.memory_space<vmem>>, vector<32x128xf32>
    %cst_24 = arith.constant dense<0.000000e+00> : vector<128x128xf32>
    %36 = tpu.matmul %34, %35, %cst_24 {dimension_numbers = #tpu.dot_dimension_numbers<[1], [0], [0], [1], [0, 0, 1, 1], [], []>} : vector<128x32xf32>, vector<32x128xf32>, vector<128x128xf32> -> vector<128x128xf32>
    %c0_25 = arith.constant 0 : index
    %c0_26 = arith.constant 0 : index
    %37 = vector.load %arg7[%c0_25, %c0_26] : memref<1x128xf32, #tpu.memory_space<vmem>>, vector<1x128xf32>
    %38 = vector.broadcast %37 : vector<1x128xf32> to vector<128x128xf32>
    %39 = arith.addf %36, %38 : vector<128x128xf32>
    %cst_27 = arith.constant dense<0xFF800000> : vector<128xf32>
    %40 = vector.multi_reduction <maximumf>, %39, %cst_27 [1] : vector<128x128xf32> to vector<128xf32>
    %41 = vector.shape_cast %40 : vector<128xf32> to vector<128x1xf32>
    %42 = vector.broadcast %41 : vector<128x1xf32> to vector<128x128xf32>
    %43 = arith.subf %39, %42 : vector<128x128xf32>
    %44 = math.exp %43 : vector<128x128xf32>
    %cst_28 = arith.constant dense<0.000000e+00> : vector<128xf32>
    %45 = vector.multi_reduction <add>, %44, %cst_28 [1] : vector<128x128xf32> to vector<128xf32>
    %46 = vector.shape_cast %45 : vector<128xf32> to vector<128x1xf32>
    %47 = vector.broadcast %46 : vector<128x1xf32> to vector<128x128xf32>
    %48 = arith.divf %44, %47 : vector<128x128xf32>
    %49 = vector.extract_strided_slice %48 {offsets = [0, 0], sizes = [128, 3], strides = [1, 1]} : vector<128x128xf32> to vector<128x3xf32>
    %c0_29 = arith.constant 0 : index
    %c0_30 = arith.constant 0 : index
    %50 = vector.load %arg8[%c0_29, %c0_30] : memref<128x3xf32, #tpu.memory_space<vmem>>, vector<128x3xf32>
    tpu.vector_store %arg8[%c0_29, %c0_30], %49 {strides = array<i32>} : memref<128x3xf32, #tpu.memory_space<vmem>>, vector<128x3xf32>,
    return
  }
  func.func @transform_0(%arg0: i32) -> (i32, i32) {
    %c0_i32 = arith.constant 0 : i32
    %c0_i32_0 = arith.constant 0 : i32
    return %arg0, %c0_i32 : i32, i32
  }
  func.func @transform_1(%arg0: i32) -> (i32, i32) {
    %c0_i32 = arith.constant 0 : i32
    %c0_i32_0 = arith.constant 0 : i32
    %c0_i32_1 = arith.constant 0 : i32
    return %c0_i32, %c0_i32_0 : i32, i32
  }
  func.func @transform_2(%arg0: i32) -> (i32, i32) {
    %c0_i32 = arith.constant 0 : i32
    %c0_i32_0 = arith.constant 0 : i32
    %c0_i32_1 = arith.constant 0 : i32
    return %c0_i32, %c0_i32_0 : i32, i32
  }
  func.func @transform_3(%arg0: i32) -> (i32, i32, i32) {
    %c0_i32 = arith.constant 0 : i32
    %c0_i32_0 = arith.constant 0 : i32
    %c0_i32_1 = arith.constant 0 : i32
    %c0_i32_2 = arith.constant 0 : i32
    return %c0_i32, %c0_i32_0, %c0_i32_1 : i32, i32, i32
  }
  func.func @transform_4(%arg0: i32) -> (i32, i32, i32) {
    %c0_i32 = arith.constant 0 : i32
    %c0_i32_0 = arith.constant 0 : i32
    %c0_i32_1 = arith.constant 0 : i32
    %c0_i32_2 = arith.constant 0 : i32
    return %c0_i32, %c0_i32_0, %c0_i32_1 : i32, i32, i32
  }
  func.func @transform_5(%arg0: i32) -> (i32, i32) {
    %c0_i32 = arith.constant 0 : i32
    %c0_i32_0 = arith.constant 0 : i32
    %c0_i32_1 = arith.constant 0 : i32
    return %c0_i32, %c0_i32_0 : i32, i32
  }
  func.func @transform_6(%arg0: i32) -> (i32, i32) {
    %c0_i32 = arith.constant 0 : i32
    %c0_i32_0 = arith.constant 0 : i32
    %c0_i32_1 = arith.constant 0 : i32
    return %c0_i32, %c0_i32_0 : i32, i32
  }
  func.func @transform_7(%arg0: i32) -> (i32, i32) {
    %c0_i32 = arith.constant 0 : i32
    %c0_i32_0 = arith.constant 0 : i32
    return %arg0, %c0_i32 : i32, i32
  }
}

</mosaic_0001>

<bundles_post_ra>
// kernel: tpu_custom_call.1
= control target key start
LH: loop header
LB: loop body
LE: loop exit
PB: predicated region body
PF: predicated region fallthrough
CT: control target
= control target key end

     0   :  { %s1779_s24 = smov 0   ;;  %s2128_s0 = inlined_call_operand.vmem [shape: f32[256,2], index: 0, kind: input, shape index: {}]   ;;  %s2129_s1 = inlined_call_operand.vmem [shape: f32[2,32], index: 1, kind: input, shape index: {}]   ;;  %s2130_s2 = inlined_call_operand.vmem [shape: f32[1,32], index: 2, kind: input, shape index: {}]   ;;  %s2131_s3 = inlined_call_operand.vmem [shape: f32[2,32,32], index: 3, kind: input, shape index: {}]   ;;  %s2132_s4 = inlined_call_operand.vmem [shape: f32[2,1,32], index: 4, kind: input, shape index: {}]   ;;  %s2133_s5 = inlined_call_operand.vmem [shape: f32[32,128], index: 5, kind: input, shape index: {}]   ;;  %s2134_s6 = inlined_call_operand.vmem [shape: f32[1,128], index: 6, kind: input, shape index: {}]   ;;  %s2135_s7 = inlined_call_operand.vmem [shape: f32[256,3], index: 7, kind: output, shape index: {}]  }
   0x1 LB: > { %s1403_s25 = sadd.s32 4294967295, %s1735_s24   ;;  %p1407_p0 = scmp.ge.s32.totalorder %s1735_s24, 1  ;;  %s1735_s24 = sphi %s1779_s24, %s17_s24  }
   0x2   : > { %p238_p1 = scmp.lt.s32.totalorder %s1735_s24, 3 }
   0x4   : > { %p239_p2 = pnand %p1407_p0, %p238_p1 }
   0x5   : > { %s1408_s26 = sshll.u32 (!%p239_p2), %s1403_s25, 4 }
   0x6   : > { %242 = sbr.rel (%p239_p2) target bundleno = 1139 (0x473), region = 48  ;;  %p271_p3 = scmp.lt.s32.totalorder (!%p239_p2), %s1408_s26, 31 }
   0xb   : > { %v1737_v0 = vmov 1   ;;  %s2137_s26 = smov (!%p271_p3, %s1408_s26), 31  ;;  %v1738_v7 = vmov 0   ;;  %v542_v8 = vld [vmem:[%s2131_s3 + $0x18] sm:$0xff]  ;;  %v541_v9 = vld [vmem:[%s2131_s3 + $0x10] sm:$0xff]  ;;  %v540_v11 = vld [vmem:[%s2131_s3 + $0x8] sm:$0xff] }
   0xc   : > { %1649 = vset.pattern.permute.xlu0 %v1737_v0  ;;  %1647 = vset.pattern.permute.xlu1 %v1737_v0  ;;  %s1409_s27 = sshll.u32 %s2137_s26, 3  ;;  %v539_v12 = vld [vmem:[%s2131_s3] sm:$0xff]  ;;  %vm550_vm0 = vcmask 261120   ;;  %vm1330_vm1 = vcmask 23552  }
   0xd   : > { %s1797_s30 = scalar_lea.vmem %s2128_s0, %s1409_s27  ;;  %1533 = vmatprep.subr.mxu0 %v542_v8  ;;  %1629 = vmatprep.subr.mxu1 %v542_v8  ;;  %v1848_v28 = vld [vmem:[%s2129_s1 + $0x1] ss:$0 sm:$0xff]  ;;  %v1853_v29 = vld [vmem:[%s2129_s1] ss:$0 sm:$0xff]  ;;  %s2075_s29 = scalar_lea.vmem %s2135_s7, %s1409_s27 }
   0xe   : > { %v284_v1 = vld [vmem:[%s1797_s30 + $0x10] sm:$0xff]  ;;  %v282_v2 = vld [vmem:[%s1797_s30] sm:$0xff]  ;;  %v283_v4 = vld [vmem:[%s1797_s30 + $0x8] sm:$0xff]  ;;  %1534 = vmatpush3.msra.mxu0 %v542_v8  ;;  %1633 = vmatpush3.msra.mxu1 %v542_v8 }
   0xf   : > { %432 = vperm.xlu0 %1649, %v284_v1   ;;  %424 = vperm.xlu1 %1647, %v282_v2   ;;  %v288_v3 = vld [vmem:[%s1797_s30 + $0x30] sm:$0xff]  ;;  %v285_v6 = vld [vmem:[%s1797_s30 + $0x18] sm:$0xff]  ;;  %v286_v10 = vld [vmem:[%s1797_s30 + $0x20] sm:$0xff] }
  0x10   : > { %v292_v5 = vld [vmem:[%s1797_s30 + $0x50] sm:$0xff]  ;;  %1535 = vmatprep.subr.mxu0 %v541_v9  ;;  %1630 = vmatprep.subr.mxu1 %v541_v9  ;;  %v287_v13 = vld [vmem:[%s1797_s30 + $0x28] sm:$0xff]  ;;  %v289_v15 = vld [vmem:[%s1797_s30 + $0x38] sm:$0xff] }
  0x11   : > { %1536 = vmatpush3.msra.mxu0 %v541_v9  ;;  %1634 = vmatpush3.msra.mxu1 %v541_v9  ;;  %v291_v14 = vld [vmem:[%s1797_s30 + $0x48] sm:$0xff]  ;;  %v290_v17 = vld [vmem:[%s1797_s30 + $0x40] sm:$0xff]  ;;  %v296_v18 = vld [vmem:[%s1797_s30 + $0x70] sm:$0xff] }
  0x12   : > { %1537 = vmatprep.subr.mxu0 %v540_v11  ;;  %1631 = vmatprep.subr.mxu1 %v540_v11  ;;  %v295_v16 = vld [vmem:[%s1797_s30 + $0x68] sm:$0xff]  ;;  %v293_v19 = vld [vmem:[%s1797_s30 + $0x58] sm:$0xff]  ;;  %v294_v20 = vld [vmem:[%s1797_s30 + $0x60] sm:$0xff] }
  0x13   : > { %448 = vperm.xlu0 %1649, %v288_v3   ;;  %428 = vperm.xlu1 %1647, %v283_v4   ;;  %v297_v21 = vld [vmem:[%s1797_s30 + $0x78] sm:$0xff]  ;;  %v1859_v33 = vld [vmem:[%s2130_s2] ss:$0 sm:$0xff] }
  0x14   : > { %1538 = vmatpush3.msra.mxu0 %v540_v11  ;;  %1635 = vmatpush3.msra.mxu1 %v540_v11 }
  0x15   : > { %1539 = vmatprep.subr.mxu0 %v539_v12  ;;  %1632 = vmatprep.subr.mxu1 %v539_v12 }
  0x16   : > { %1540 = vmatpush3.msra.mxu0 %v539_v12  ;;  %1636 = vmatpush3.msra.mxu1 %v539_v12 }
  0x17   : > { %464 = vperm.xlu0 %1649, %v292_v5   ;;  %1648 = vset.pattern.permute.xlu1 %v1738_v7 }
  0x18   : > { %317 = vperm.xlu1 %1648, %v285_v6  }
  0x1b   : > { %1658 = vset.pattern.permute.xlu0 %v1738_v7 }
  0x1c   : > { %302 = vperm.xlu0 %1658, %v282_v2   ;;  %1650 = vset.pattern.permute.xlu1 %v1737_v0 }
  0x1d   : > { %436 = vperm.xlu1 %1650, %v285_v6  }
  0x20   : > { %307 = vperm.xlu0 %1658, %v283_v4  }
  0x21   : > { %1651 = vset.pattern.permute.xlu1 %v1738_v7 }
  0x22   : > { %322 = vperm.xlu1 %1651, %v286_v10  }
  0x24   : > { %312 = vperm.xlu0 %1658, %v284_v1  }
  0x26   : > { %1652 = vset.pattern.permute.xlu1 %v1737_v0 }
  0x27   : > { %440 = vperm.xlu1 %1652, %v286_v10  }
  0x28   : > { %327 = vperm.xlu0 %1658, %v287_v13  }
  0x2b   : > { %444 = vperm.xlu1 %1652, %v287_v13  }
  0x2c   : > { %332 = vperm.xlu0 %1658, %v288_v3  }
  0x2f   : > { %1653 = vset.pattern.permute.xlu1 %v1738_v7 }
  0x30   : > { %347 = vperm.xlu0 %1658, %v291_v14   ;;  %337 = vperm.xlu1 %1653, %v289_v15  }
  0x34   : > { %352 = vperm.xlu0 %1658, %v292_v5   ;;  %1654 = vset.pattern.permute.xlu1 %v1737_v0 }
  0x35   : > { %452 = vperm.xlu1 %1654, %v289_v15  }
  0x38   : > { %367 = vperm.xlu0 %1658, %v295_v16  }
  0x39   : > { %1655 = vset.pattern.permute.xlu1 %v1738_v7 }
  0x3a   : > { %342 = vperm.xlu1 %1655, %v290_v17  }
  0x3c   : > { %372 = vperm.xlu0 %1658, %v296_v18  }
  0x3e   : > { %1656 = vset.pattern.permute.xlu1 %v1737_v0 }
  0x3f   : > { %456 = vperm.xlu1 %1656, %v290_v17  }
  0x40   : > { %1663 = vset.pattern.permute.xlu0 %v1737_v0 }
  0x41   : > { %480 = vperm.xlu0 %1663, %v296_v18  }
  0x43   : > { %460 = vperm.xlu1 %1656, %v291_v14  }
  0x47   : > { %1657 = vset.pattern.permute.xlu1 %v1738_v7 }
  0x48   : > { %357 = vperm.xlu1 %1657, %v293_v19  }
  0x4c   : > { %1659 = vset.pattern.permute.xlu1 %v1737_v0 }
  0x4d   : > { %468 = vperm.xlu1 %1659, %v293_v19  }
  0x51   : > { %1660 = vset.pattern.permute.xlu1 %v1738_v7 }
  0x52   : > { %362 = vperm.xlu1 %1660, %v294_v20  }
  0x56   : > { %1661 = vset.pattern.permute.xlu1 %v1737_v0 }
  0x57   : > { %472 = vperm.xlu1 %1661, %v294_v20  }
  0x5b   : > { %476 = vperm.xlu1 %1661, %v295_v16  }
  0x5f   : > { %1662 = vset.pattern.permute.xlu1 %v1738_v7 }
  0x60   : > { %377 = vperm.xlu1 %1662, %v297_v21  }
  0x64   : > { %1664 = vset.pattern.permute.xlu1 %v1737_v0 }
  0x65   : > { %484 = vperm.xlu1 %1664, %v297_v21  }
  0x8a   : > { %v425_v22 = vpop.permute.xlu1 %424  ;;  %v433_v23 = vpop.permute.xlu0 %432 }
  0x8b   : > { %v491_v34 = vmul.f32 %v1848_v28, %v425_v22  ;;  %v493_v47 = vmul.f32 %v1848_v28, %v433_v23 }
  0x8e   : > { %v429_v24 = vpop.permute.xlu1 %428  ;;  %v449_v25 = vpop.permute.xlu0 %448 }
  0x8f   : > { %v492_v41 = vmul.f32 %v1848_v28, %v429_v24  ;;  %v497_v4 = vmul.f32 %v1848_v28, %v449_v25 }
  0x92   : > { %v1843_v26 = vpop.permute.xlu0 %464 }
  0x93   : > { %v318_v27 = vpop.permute.xlu1 %317 }
  0x94   : > { %v387_v39 = vmul.f32 %v1853_v29, %v318_v27 }
  0x96   : > { %v409_v50 = vadd.f32 %v1859_v33, %v387_v39 }
  0x97   : > { %v303_v30 = vpop.permute.xlu0 %302 }
  0x98   : > { %v384_v31 = vmul.f32 %v1853_v29, %v303_v30  ;;  %v437_v32 = vpop.permute.xlu1 %436 }
  0x99   : > { %v494_v44 = vmul.f32 %v1848_v28, %v437_v32  ;;  %v501_v32 = vmul.f32 %v1848_v28, %v1843_v26 }
  0x9a   : > { %v406_v35 = vadd.f32 %v1859_v33, %v384_v31 }
  0x9b   : > { %v308_v36 = vpop.permute.xlu0 %307  ;;  %v510_v54 = vadd.f32 %v494_v44, %v409_v50 }
  0x9c   : > { %v385_v37 = vmul.f32 %v1853_v29, %v308_v36  ;;  %v507_v38 = vadd.f32 %v491_v34, %v406_v35 }
  0x9d   : > { %v323_v40 = vpop.permute.xlu1 %322  ;;  %v526_v0 = vmax.f32 %v510_v54, 0.0 }
  0x9e   : > { %v407_v42 = vadd.f32 %v1859_v33, %v385_v37  ;;  %v523_v43 = vmax.f32 %v507_v38, 0.0  ;;  %v388_v45 = vmul.f32 %v1853_v29, %v323_v40 }
  0x9f   : > { %v313_v46 = vpop.permute.xlu0 %312 }
  0xa0   : > { %v508_v48 = vadd.f32 %v492_v41, %v407_v42  ;;  %v386_v49 = vmul.f32 %v1853_v29, %v313_v46  ;;  %1541 = vmatprep.mubr.msk.f32.mxu0 %vm550_vm0, %v523_v43  ;;  %v410_v55 = vadd.f32 %v1859_v33, %v388_v45 }
  0xa2   : > { %v524_v51 = vmax.f32 %v508_v48, 0.0  ;;  %v408_v52 = vadd.f32 %v1859_v33, %v386_v49  ;;  %v441_v53 = vpop.permute.xlu1 %440 }
  0xa3   : > { %v495_v56 = vmul.f32 %v1848_v28, %v441_v53  ;;  %v328_v57 = vpop.permute.xlu0 %327 }
  0xa4   : > { %v509_v58 = vadd.f32 %v493_v47, %v408_v52  ;;  %v389_v59 = vmul.f32 %v1853_v29, %v328_v57  ;;  %1542 = vmatmul.mubr.msk.f32.vlgmr.msra.gmra.mxu0 %vm550_vm0, %v524_v51 }
  0xa5   : > { %v511_v60 = vadd.f32 %v495_v56, %v410_v55 }
  0xa6   : > { %v525_v61 = vmax.f32 %v509_v58, 0.0  ;;  %v411_v62 = vadd.f32 %v1859_v33, %v389_v59  ;;  %v445_v63 = vpop.permute.xlu1 %444 }
  0xa7   : > { %v527_v1 = vmax.f32 %v511_v60, 0.0  ;;  %v496_v2 = vmul.f32 %v1848_v28, %v445_v63  ;;  %v333_v3 = vpop.permute.xlu0 %332 }
  0xa8   : > { %v390_v5 = vmul.f32 %v1853_v29, %v333_v3  ;;  %1544 = vmatprep.mubr.msk.f32.mxu0 %vm550_vm0, %v525_v61 }
  0xa9   : > { %v512_v6 = vadd.f32 %v496_v2, %v411_v62  ;;  %1545 = vmatmul.mubr.msk.f32.gmra.mxu0 %vm550_vm0, %v526_v0 }
  0xaa   : > { %v412_v7 = vadd.f32 %v1859_v33, %v390_v5  ;;  %1547 = vmatprep.mubr.msk.f32.mxu0 %vm550_vm0, %v527_v1 }
  0xab   : > { %v528_v8 = vmax.f32 %v512_v6, 0.0  ;;  %v338_v9 = vpop.permute.xlu1 %337  ;;  %v348_v13 = vpop.permute.xlu0 %347 }
  0xac   : > { %v513_v10 = vadd.f32 %v497_v4, %v412_v7  ;;  %v391_v11 = vmul.f32 %v1853_v29, %v338_v9  ;;  %v393_v24 = vmul.f32 %v1853_v29, %v348_v13  ;;  %v1415_v13 = vld [vmem:[%s2132_s4] ss:$0 sm:$0xff] }
  0xad   : > { %1548 = vmatmul.mubr.msk.f32.gmra.mxu0 %vm550_vm0, %v528_v8 }
  0xae   : > { %v529_v12 = vmax.f32 %v513_v10, 0.0  ;;  %v413_v15 = vadd.f32 %v1859_v33, %v391_v11  ;;  %v415_v35 = vadd.f32 %v1859_v33, %v393_v24  ;;  %v1435_v11 = vld [vmem:[%s2131_s3 + $0x38] sm:$0xff] }
  0xaf   : > { %v353_v18 = vpop.permute.xlu0 %352  ;;  %1565 = vmatprep.subr.mxu1 %v1435_v11 }
  0xb0   : > { %v453_v14 = vpop.permute.xlu1 %452  ;;  %1550 = vmatprep.mubr.msk.f32.mxu0 %vm550_vm0, %v529_v12  ;;  %v394_v22 = vmul.f32 %v1853_v29, %v353_v18 }
  0xb1   : > { %v498_v16 = vmul.f32 %v1848_v28, %v453_v14 }
  0xb2   : > { %v416_v30 = vadd.f32 %v1859_v33, %v394_v22 }
  0xb3   : > { %v514_v17 = vadd.f32 %v498_v16, %v413_v15  ;;  %v368_v43 = vpop.permute.xlu0 %367 }
  0xb4   : > { %v517_v38 = vadd.f32 %v501_v32, %v416_v30  ;;  %v397_v55 = vmul.f32 %v1853_v29, %v368_v43 }
  0xb5   : > { %v530_v19 = vmax.f32 %v514_v17, 0.0  ;;  %v343_v20 = vpop.permute.xlu1 %342 }
  0xb6   : > { %v392_v21 = vmul.f32 %v1853_v29, %v343_v20  ;;  %v533_v42 = vmax.f32 %v517_v38, 0.0  ;;  %v419_v62 = vadd.f32 %v1859_v33, %v397_v55 }
  0xb7   : > { %1551 = vmatmul.mubr.msk.f32.gmra.mxu0 %vm550_vm0, %v530_v19  ;;  %v373_v47 = vpop.permute.xlu0 %372 }
  0xb8   : > { %v414_v25 = vadd.f32 %v1859_v33, %v392_v21  ;;  %v398_v52 = vmul.f32 %v1853_v29, %v373_v47 }
  0xba   : > { %v457_v23 = vpop.permute.xlu1 %456  ;;  %v420_v58 = vadd.f32 %v1859_v33, %v398_v52 }
  0xbb   : > { %v499_v27 = vmul.f32 %v1848_v28, %v457_v23 }
  0xbc   : > { %v481_v53 = vpop.permute.xlu0 %480 }
  0xbd   : > { %v515_v31 = vadd.f32 %v499_v27, %v414_v25  ;;  %v505_v59 = vmul.f32 %v1848_v28, %v481_v53 }
  0xbe   : > { %v461_v34 = vpop.permute.xlu1 %460 }
  0xbf   : > { %v500_v36 = vmul.f32 %v1848_v28, %v461_v34  ;;  %v531_v37 = vmax.f32 %v515_v31, 0.0  ;;  %v521_v1 = vadd.f32 %v505_v59, %v420_v58 }
  0xc1   : > { %v516_v39 = vadd.f32 %v500_v36, %v415_v35  ;;  %1553 = vmatprep.mubr.msk.f32.mxu1 %vm550_vm0, %v531_v37  ;;  %v537_v5 = vmax.f32 %v521_v1, 0.0 }
  0xc3   : > { %v532_v40 = vmax.f32 %v516_v39, 0.0  ;;  %v358_v41 = vpop.permute.xlu1 %357 }
  0xc4   : > { %v395_v44 = vmul.f32 %v1853_v29, %v358_v41 }
  0xc5   : > { %1554 = vmatmul.mubr.msk.f32.vlgmr.msra.gmra.mxu1 %vm550_vm0, %v532_v40 }
  0xc6   : > { %1556 = vmatprep.mubr.msk.f32.mxu1 %vm550_vm0, %v533_v42  ;;  %v417_v45 = vadd.f32 %v1859_v33, %v395_v44  ;;  %1566 = vmatpush3.msra.mxu1 %v1435_v11 }
  0xc8   : > { %v469_v26 = vpop.permute.xlu1 %468 }
  0xc9   : > { %v502_v46 = vmul.f32 %v1848_v28, %v469_v26 }
  0xcb   : > { %v518_v48 = vadd.f32 %v502_v46, %v417_v45 }
  0xcd   : > { %v534_v49 = vmax.f32 %v518_v48, 0.0  ;;  %v363_v50 = vpop.permute.xlu1 %362 }
  0xce   : > { %v396_v51 = vmul.f32 %v1853_v29, %v363_v50 }
  0xcf   : > { %1557 = vmatmul.mubr.msk.f32.gmra.mxu1 %vm550_vm0, %v534_v49 }
  0xd0   : > { %v418_v56 = vadd.f32 %v1859_v33, %v396_v51 }
  0xd2   : > { %v473_v54 = vpop.permute.xlu1 %472 }
  0xd3   : > { %v503_v57 = vmul.f32 %v1848_v28, %v473_v54 }
  0xd5   : > { %v519_v60 = vadd.f32 %v503_v57, %v418_v56 }
  0xd6   : > { %v477_v61 = vpop.permute.xlu1 %476 }
  0xd7   : > { %v535_v63 = vmax.f32 %v519_v60, 0.0  ;;  %v504_v0 = vmul.f32 %v1848_v28, %v477_v61 }
  0xd9   : > { %v520_v2 = vadd.f32 %v504_v0, %v419_v62  ;;  %1559 = vmatprep.mubr.msk.f32.mxu1 %vm550_vm0, %v535_v63  ;;  %v985_v63 = vld [vmem:[%s2133_s5 + $0x18] sm:$0xff] }
  0xda   : > { %1597 = vmatprep.subr.mxu0 %v985_v63 }
  0xdb   : > { %v536_v3 = vmax.f32 %v520_v2, 0.0  ;;  %v378_v4 = vpop.permute.xlu1 %377  ;;  %1598 = vmatpush3.msra.mxu0 %v985_v63  ;;  %v984_v2 = vld [vmem:[%s2133_s5 + $0x10] sm:$0xff] }
  0xdc   : > { %v399_v6 = vmul.f32 %v1853_v29, %v378_v4  ;;  %v1434_v29 = vld [vmem:[%s2131_s3 + $0x30] sm:$0xff]  ;;  %1599 = vmatprep.subr.mxu0 %v984_v2  ;;  %v982_v4 = vld [vmem:[%s2133_s5] sm:$0xff] }
  0xdd   : > { %1560 = vmatmul.mubr.msk.f32.gmra.mxu1 %vm550_vm0, %v536_v3  ;;  %1567 = vmatprep.subr.mxu1 %v1434_v29  ;;  %v983_v3 = vld [vmem:[%s2133_s5 + $0x8] sm:$0xff] }
  0xde   : > { %1562 = vmatprep.mubr.msk.f32.mxu1 %vm550_vm0, %v537_v5  ;;  %v421_v8 = vadd.f32 %v1859_v33, %v399_v6  ;;  %v1433_v33 = vld [vmem:[%s2131_s3 + $0x28] sm:$0xff]  ;;  %1568 = vmatpush3.msra.mxu1 %v1434_v29  ;;  %v1437_v5 = vld [vmem:[%s2132_s4 + $0x1] ss:$0 sm:$0xff] }
  0xdf   : > { %1569 = vmatprep.subr.mxu1 %v1433_v33  ;;  %1600 = vmatpush3.msra.mxu0 %v984_v2 }
  0xe0   : > { %v485_v7 = vpop.permute.xlu1 %484  ;;  %1570 = vmatpush3.msra.mxu1 %v1433_v33  ;;  %1601 = vmatprep.subr.mxu0 %v983_v3 }
  0xe1   : > { %v506_v9 = vmul.f32 %v1848_v28, %v485_v7  ;;  %v1432_v28 = vld [vmem:[%s2131_s3 + $0x20] sm:$0xff]  ;;  %1602 = vmatpush3.msra.mxu0 %v983_v3 }
  0xe2   : > { %1571 = vmatprep.subr.mxu1 %v1432_v28  ;;  %1603 = vmatprep.subr.mxu0 %v982_v4 }
  0xe3   : > { %v522_v10 = vadd.f32 %v506_v9, %v421_v8  ;;  %1572 = vmatpush3.msra.mxu1 %v1432_v28  ;;  %1604 = vmatpush3.msra.mxu0 %v982_v4 }
  0xe5   : > { %v538_v12 = vmax.f32 %v522_v10, 0.0 }
  0xe7   : > { %1563 = vmatmul.mubr.msk.f32.gmra.mxu1 %vm550_vm0, %v538_v12 }
 0x164   : > { %v1543_v14 = vpop.f32.mrf.mxu0 }
 0x165   : > { %v671_v15 = vadd.f32 %v1543_v14, %v1415_v13 }
 0x166   : > { %v665_v16 = vpop.f32.mrf.mxu0 }
 0x167   : > { %v666_v17 = vadd.f32 %v1415_v13, %v665_v16  ;;  %v745_v20 = vmax.f32 %v671_v15, 0.0 }
 0x169   : > { %v744_v18 = vmax.f32 %v666_v17, 0.0  ;;  %v1546_v19 = vpop.f32.mrf.mxu0 }
 0x16a   : > { %v681_v21 = vadd.f32 %v1546_v19, %v1415_v13 }
 0x16b   : > { %v675_v22 = vpop.f32.mrf.mxu0  ;;  %1573 = vmatprep.mubr.msk.f32.mxu1 %vm550_vm0, %v744_v18 }
 0x16c   : > { %v676_v23 = vadd.f32 %v1415_v13, %v675_v22  ;;  %1574 = vmatmul.mubr.msk.f32.vlgmr.msra.gmra.mxu1 %vm550_vm0, %v745_v20  ;;  %v747_v27 = vmax.f32 %v681_v21, 0.0 }
 0x16d   : > { %v1549_v24 = vpop.f32.mrf.mxu0 }
 0x16e   : > { %v746_v25 = vmax.f32 %v676_v23, 0.0  ;;  %v691_v30 = vadd.f32 %v1549_v24, %v1415_v13 }
 0x16f   : > { %v685_v31 = vpop.f32.mrf.mxu0 }
 0x170   : > { %v686_v32 = vadd.f32 %v1415_v13, %v685_v31  ;;  %1576 = vmatprep.mubr.msk.f32.mxu1 %vm550_vm0, %v746_v25  ;;  %v749_v35 = vmax.f32 %v691_v30, 0.0 }
 0x171   : > { %1577 = vmatmul.mubr.msk.f32.gmra.mxu1 %vm550_vm0, %v747_v27 }
 0x172   : > { %v748_v34 = vmax.f32 %v686_v32, 0.0 }
 0x174   : > { %1579 = vmatprep.mubr.msk.f32.mxu1 %vm550_vm0, %v748_v34 }
 0x175   : > { %1580 = vmatmul.mubr.msk.f32.gmra.mxu1 %vm550_vm0, %v749_v35 }
 0x177   : > { %v1552_v36 = vpop.f32.mrf.mxu0 }
 0x178   : > { %v701_v37 = vadd.f32 %v1552_v36, %v1415_v13 }
 0x179   : > { %v695_v38 = vpop.f32.mrf.mxu0 }
 0x17a   : > { %v696_v39 = vadd.f32 %v1415_v13, %v695_v38  ;;  %v751_v41 = vmax.f32 %v701_v37, 0.0 }
 0x17c   : > { %v750_v40 = vmax.f32 %v696_v39, 0.0 }
 0x17e   : > { %1582 = vmatprep.mubr.msk.f32.mxu1 %vm550_vm0, %v750_v40 }
 0x17f   : > { %1583 = vmatmul.mubr.msk.f32.gmra.mxu1 %vm550_vm0, %v751_v41 }
 0x185   : > { %v1555_v42 = vpop.f32.mrf.mxu1 }
 0x186   : > { %v711_v43 = vadd.f32 %v1555_v42, %v1415_v13 }
 0x187   : > { %v705_v44 = vpop.f32.mrf.mxu1 }
 0x188   : > { %v706_v26 = vadd.f32 %v1415_v13, %v705_v44  ;;  %v753_v46 = vmax.f32 %v711_v43, 0.0 }
 0x18a   : > { %v752_v45 = vmax.f32 %v706_v26, 0.0 }
 0x18c   : > { %1585 = vmatprep.mubr.msk.f32.mxu1 %vm550_vm0, %v752_v45 }
 0x18d   : > { %1586 = vmatmul.mubr.msk.f32.gmra.mxu1 %vm550_vm0, %v753_v46 }
 0x18f   : > { %v1558_v47 = vpop.f32.mrf.mxu1 }
 0x190   : > { %v721_v48 = vadd.f32 %v1558_v47, %v1415_v13 }
 0x191   : > { %v715_v49 = vpop.f32.mrf.mxu1 }
 0x192   : > { %v716_v50 = vadd.f32 %v1415_v13, %v715_v49  ;;  %v755_v52 = vmax.f32 %v721_v48, 0.0 }
 0x194   : > { %v754_v51 = vmax.f32 %v716_v50, 0.0 }
 0x196   : > { %1588 = vmatprep.mubr.msk.f32.mxu1 %vm550_vm0, %v754_v51 }
 0x197   : > { %1589 = vmatmul.mubr.msk.f32.gmra.mxu1 %vm550_vm0, %v755_v52 }
 0x19d   : > { %v1561_v53 = vpop.f32.mrf.mxu1 }
 0x19e   : > { %v731_v54 = vadd.f32 %v1561_v53, %v1415_v13 }
 0x19f   : > { %v725_v55 = vpop.f32.mrf.mxu1 }
 0x1a0   : > { %v726_v56 = vadd.f32 %v1415_v13, %v725_v55  ;;  %v757_v58 = vmax.f32 %v731_v54, 0.0  ;;  %v1454_v54 = vld [vmem:[%s2134_s6] ss:$0 sm:$0xff] }
 0x1a2   : > { %v756_v57 = vmax.f32 %v726_v56, 0.0 }
 0x1a4   : > { %1591 = vmatprep.mubr.msk.f32.mxu1 %vm550_vm0, %v756_v57 }
 0x1a5   : > { %1592 = vmatmul.mubr.msk.f32.gmra.mxu1 %vm550_vm0, %v757_v58 }
 0x1a7   : > { %v1564_v59 = vpop.f32.mrf.mxu1 }
 0x1a8   : > { %v741_v60 = vadd.f32 %v1564_v59, %v1415_v13 }
 0x1a9   : > { %v735_v61 = vpop.f32.mrf.mxu1 }
 0x1aa   : > { %v736_v62 = vadd.f32 %v1415_v13, %v735_v61  ;;  %v759_v1 = vmax.f32 %v741_v60, 0.0 }
 0x1ac   : > { %v758_v0 = vmax.f32 %v736_v62, 0.0 }
 0x1ae   : > { %1594 = vmatprep.mubr.msk.f32.mxu1 %vm550_vm0, %v758_v0 }
 0x1af   : > { %1595 = vmatmul.mubr.msk.f32.gmra.mxu1 %vm550_vm0, %v759_v1 }
 0x22c   : > { %v1575_v6 = vpop.f32.mrf.mxu1 }
 0x22d   : > { %v893_v7 = vadd.f32 %v1575_v6, %v1437_v5 }
 0x22e   : > { %v887_v8 = vpop.f32.mrf.mxu1 }
 0x22f   : > { %v888_v9 = vadd.f32 %v1437_v5, %v887_v8  ;;  %v967_v12 = vmax.f32 %v893_v7, 0.0 }
 0x231   : > { %v966_v10 = vmax.f32 %v888_v9, 0.0  ;;  %v1578_v11 = vpop.f32.mrf.mxu1 }
 0x232   : > { %v903_v29 = vadd.f32 %v1578_v11, %v1437_v5 }
 0x233   : > { %v897_v33 = vpop.f32.mrf.mxu1  ;;  %1605 = vmatprep.mubr.msk.f32.mxu0 %vm550_vm0, %v966_v10 }
 0x234   : > { %v898_v28 = vadd.f32 %v1437_v5, %v897_v33  ;;  %1606 = vmatmul.mubr.msk.f32.vlgmr.msra.gmra.mxu0 %vm550_vm0, %v967_v12  ;;  %v969_v15 = vmax.f32 %v903_v29, 0.0 }
 0x235   : > { %v1581_v13 = vpop.f32.mrf.mxu1 }
 0x236   : > { %v968_v14 = vmax.f32 %v898_v28, 0.0  ;;  %v913_v16 = vadd.f32 %v1581_v13, %v1437_v5 }
 0x237   : > { %v907_v17 = vpop.f32.mrf.mxu1 }
 0x238   : > { %v908_v18 = vadd.f32 %v1437_v5, %v907_v17  ;;  %1608 = vmatprep.mubr.msk.f32.mxu0 %vm550_vm0, %v968_v14  ;;  %v971_v20 = vmax.f32 %v913_v16, 0.0 }
 0x239   : > { %1609 = vmatmul.mubr.msk.f32.gmra.mxu0 %vm550_vm0, %v969_v15 }
 0x23a   : > { %v970_v19 = vmax.f32 %v908_v18, 0.0 }
 0x23c   : > { %1611 = vmatprep.mubr.msk.f32.mxu0 %vm550_vm0, %v970_v19 }
 0x23d   : > { %1612 = vmatmul.mubr.msk.f32.gmra.mxu0 %vm550_vm0, %v971_v20 }
 0x23f   : > { %v1584_v21 = vpop.f32.mrf.mxu1 }
 0x240   : > { %v923_v22 = vadd.f32 %v1584_v21, %v1437_v5 }
 0x241   : > { %v917_v23 = vpop.f32.mrf.mxu1 }
 0x242   : > { %v918_v24 = vadd.f32 %v1437_v5, %v917_v23  ;;  %v973_v27 = vmax.f32 %v923_v22, 0.0 }
 0x244   : > { %v972_v25 = vmax.f32 %v918_v24, 0.0 }
 0x246   : > { %1614 = vmatprep.mubr.msk.f32.mxu0 %vm550_vm0, %v972_v25 }
 0x247   : > { %1615 = vmatmul.mubr.msk.f32.gmra.mxu0 %vm550_vm0, %v973_v27 }
 0x24d   : > { %v1587_v30 = vpop.f32.mrf.mxu1 }
 0x24e   : > { %v933_v31 = vadd.f32 %v1587_v30, %v1437_v5 }
 0x24f   : > { %v927_v32 = vpop.f32.mrf.mxu1 }
 0x250   : > { %v928_v34 = vadd.f32 %v1437_v5, %v927_v32  ;;  %v975_v36 = vmax.f32 %v933_v31, 0.0 }
 0x252   : > { %v974_v35 = vmax.f32 %v928_v34, 0.0 }
 0x254   : > { %1617 = vmatprep.mubr.msk.f32.mxu0 %vm550_vm0, %v974_v35 }
 0x255   : > { %1618 = vmatmul.mubr.msk.f32.gmra.mxu0 %vm550_vm0, %v975_v36 }
 0x257   : > { %v1590_v37 = vpop.f32.mrf.mxu1 }
 0x258   : > { %v943_v38 = vadd.f32 %v1590_v37, %v1437_v5 }
 0x259   : > { %v937_v39 = vpop.f32.mrf.mxu1 }
 0x25a   : > { %v938_v40 = vadd.f32 %v1437_v5, %v937_v39  ;;  %v977_v42 = vmax.f32 %v943_v38, 0.0 }
 0x25c   : > { %v976_v41 = vmax.f32 %v938_v40, 0.0 }
 0x25e   : > { %1620 = vmatprep.mubr.msk.f32.mxu0 %vm550_vm0, %v976_v41 }
 0x25f   : > { %1621 = vmatmul.mubr.msk.f32.gmra.mxu0 %vm550_vm0, %v977_v42 }
 0x265   : > { %v1593_v43 = vpop.f32.mrf.mxu1 }
 0x266   : > { %v953_v44 = vadd.f32 %v1593_v43, %v1437_v5 }
 0x267   : > { %v947_v26 = vpop.f32.mrf.mxu1 }
 0x268   : > { %v948_v45 = vadd.f32 %v1437_v5, %v947_v26  ;;  %v979_v47 = vmax.f32 %v953_v44, 0.0 }
 0x26a   : > { %v978_v46 = vmax.f32 %v948_v45, 0.0 }
 0x26c   : > { %1623 = vmatprep.mubr.msk.f32.mxu0 %vm550_vm0, %v978_v46 }
 0x26d   : > { %1624 = vmatmul.mubr.msk.f32.gmra.mxu0 %vm550_vm0, %v979_v47 }
 0x26f   : > { %v1596_v48 = vpop.f32.mrf.mxu1 }
 0x270   : > { %v963_v49 = vadd.f32 %v1596_v48, %v1437_v5 }
 0x271   : > { %v957_v50 = vpop.f32.mrf.mxu1 }
 0x272   : > { %v958_v51 = vadd.f32 %v1437_v5, %v957_v50  ;;  %v981_v53 = vmax.f32 %v963_v49, 0.0 }
 0x274   : > { %v980_v52 = vmax.f32 %v958_v51, 0.0 }
 0x276   : > { %1626 = vmatprep.mubr.msk.f32.mxu0 %vm550_vm0, %v980_v52 }
 0x277   : > { %1627 = vmatmul.mubr.msk.f32.gmra.mxu0 %vm550_vm0, %v981_v53 }
 0x2f4   : > { %v1607_v55 = vpop.f32.mrf.mxu0 }
 0x2f5   : > { %v1113_v56 = vadd.f32 %v1607_v55, %v1454_v54 }
 0x2f6   : > { %v1107_v57 = vpop.f32.mrf.mxu0 }
 0x2f7   : > { %v1108_v58 = vadd.f32 %v1454_v54, %v1107_v57  ;;  %1188 = vmax.xlane.f32.xlu0 %v1113_v56 }
 0x2f9   : > { %v1610_v59 = vpop.f32.mrf.mxu0  ;;  %1186 = vmax.xlane.f32.xlu1 %v1108_v58 }
 0x2fa   : > { %v1123_v60 = vadd.f32 %v1610_v59, %v1454_v54 }
 0x2fb   : > { %v1117_v61 = vpop.f32.mrf.mxu0 }
 0x2fc   : > { %v1118_v62 = vadd.f32 %v1454_v54, %v1117_v61 }
 0x2fd   : > { %v1613_v63 = vpop.f32.mrf.mxu0  ;;  %1192 = vmax.xlane.f32.xlu1 %v1123_v60 }
 0x2fe   : > { %v1133_v0 = vadd.f32 %v1613_v63, %v1454_v54  ;;  %1190 = vmax.xlane.f32.xlu0 %v1118_v62 }
 0x2ff   : > { %v1127_v1 = vpop.f32.mrf.mxu0 }
 0x300   : > { %v1128_v2 = vadd.f32 %v1454_v54, %v1127_v1 }
 0x301   : > { %1196 = vmax.xlane.f32.xlu1 %v1133_v0 }
 0x302   : > { %1194 = vmax.xlane.f32.xlu0 %v1128_v2 }
 0x307   : > { %v1616_v3 = vpop.f32.mrf.mxu0 }
 0x308   : > { %v1143_v4 = vadd.f32 %v1616_v3, %v1454_v54 }
 0x309   : > { %v1137_v5 = vpop.f32.mrf.mxu0 }
 0x30a   : > { %v1138_v6 = vadd.f32 %v1454_v54, %v1137_v5  ;;  %1200 = vmax.xlane.f32.xlu1 %v1143_v4 }
 0x30c   : > { %1198 = vmax.xlane.f32.xlu0 %v1138_v6 }
 0x315   : > { %v1619_v7 = vpop.f32.mrf.mxu0 }
 0x316   : > { %v1990_v8 = vadd.f32 %v1619_v7, %v1454_v54 }
 0x317   : > { %v1147_v9 = vpop.f32.mrf.mxu0 }
 0x318   : > { %v1992_v10 = vadd.f32 %v1454_v54, %v1147_v9  ;;  %1204 = vmax.xlane.f32.xlu1 %v1990_v8 }
 0x31a   : > { %1202 = vmax.xlane.f32.xlu0 %v1992_v10 }
 0x31f   : > { %v1622_v11 = vpop.f32.mrf.mxu0 }
 0x320   : > { %v1996_v12 = vadd.f32 %v1622_v11, %v1454_v54 }
 0x321   : > { %v1157_v29 = vpop.f32.mrf.mxu0 }
 0x322   : > { %v1998_v33 = vadd.f32 %v1454_v54, %v1157_v29  ;;  %1208 = vmax.xlane.f32.xlu1 %v1996_v12 }
 0x324   : > { %1206 = vmax.xlane.f32.xlu0 %v1998_v33 }
 0x32d   : > { %v1625_v28 = vpop.f32.mrf.mxu0 }
 0x32e   : > { %v2002_v13 = vadd.f32 %v1625_v28, %v1454_v54 }
 0x32f   : > { %v1167_v14 = vpop.f32.mrf.mxu0 }
 0x330   : > { %v2004_v15 = vadd.f32 %v1454_v54, %v1167_v14  ;;  %1212 = vmax.xlane.f32.xlu1 %v2002_v13 }
 0x332   : > { %1210 = vmax.xlane.f32.xlu0 %v2004_v15 }
 0x337   : > { %v1628_v16 = vpop.f32.mrf.mxu0 }
 0x338   : > { %v2008_v17 = vadd.f32 %v1628_v16, %v1454_v54 }
 0x339   : > { %v1177_v18 = vpop.f32.mrf.mxu0 }
 0x33a   : > { %v2010_v19 = vadd.f32 %v1454_v54, %v1177_v18  ;;  %1216 = vmax.xlane.f32.xlu1 %v2008_v17 }
 0x33c   : > { %1214 = vmax.xlane.f32.xlu0 %v2010_v19 }
 0x380   : > { %v1189_v20 = vpop.xlane.xlu0 %1188 }
 0x381   : > { %v1219_v21 = vsub.f32 %v1113_v56, %v1189_v20 }
 0x382   : > { %v1187_v22 = vpop.xlane.xlu1 %1186 }
 0x383   : > { %v1236_v23 = vmul.f32 1.442695, %v1219_v21  ;;  %v1218_v24 = vsub.f32 %v1108_v58, %v1187_v22 }
 0x385   : > { %1665 = vpow2.f32 %v1236_v23  ;;  %v1234_v25 = vmul.f32 1.442695, %v1218_v24 }
 0x386   : > { %v1193_v27 = vpop.xlane.xlu1 %1192 }
 0x387   : > { %1667 = vpow2.f32 %v1234_v25  ;;  %v1221_v30 = vsub.f32 %v1123_v60, %v1193_v27  ;;  %v1191_v31 = vpop.xlane.xlu0 %1190 }
 0x388   : > { %v1220_v32 = vsub.f32 %v1118_v62, %v1191_v31 }
 0x389   : > { %v1240_v34 = vmul.f32 1.442695, %v1221_v30 }
 0x38a   : > { %v1238_v35 = vmul.f32 1.442695, %v1220_v32  ;;  %v1197_v36 = vpop.xlane.xlu1 %1196 }
 0x38b   : > { %1669 = vpow2.f32 %v1240_v34  ;;  %v1223_v37 = vsub.f32 %v1133_v0, %v1197_v36  ;;  %v1195_v38 = vpop.xlane.xlu0 %1194 }
 0x38c   : > { %1671 = vpow2.f32 %v1238_v35  ;;  %v1222_v39 = vsub.f32 %v1128_v2, %v1195_v38 }
 0x38d   : > { %v1244_v40 = vmul.f32 1.442695, %v1223_v37 }
 0x38e   : > { %v1242_v41 = vmul.f32 1.442695, %v1222_v39 }
 0x38f   : > { %1673 = vpow2.f32 %v1244_v40 }
 0x390   : > { %1675 = vpow2.f32 %v1242_v41 }
 0x392   : > { %v2014_v42 = vpop.eup %1665 }
 0x393   : > { %v1201_v43 = vpop.xlane.xlu1 %1200  ;;  %1268 = vadd.xlane.f32.xlu1 %v2014_v42 }
 0x394   : > { %v2017_v44 = vpop.eup %1667  ;;  %v1225_v26 = vsub.f32 %v1143_v4, %v1201_v43 }
 0x395   : > { %v1199_v45 = vpop.xlane.xlu0 %1198  ;;  %1266 = vadd.xlane.f32.xlu0 %v2017_v44 }
 0x396   : > { %v1248_v46 = vmul.f32 1.442695, %v1225_v26  ;;  %v1224_v47 = vsub.f32 %v1138_v6, %v1199_v45 }
 0x398   : > { %v2020_v48 = vpop.eup %1669  ;;  %1677 = vpow2.f32 %v1248_v46  ;;  %v1246_v49 = vmul.f32 1.442695, %v1224_v47 }
 0x399   : > { %v2022_v50 = vpop.eup %1671  ;;  %1272 = vadd.xlane.f32.xlu1 %v2020_v48 }
 0x39a   : > { %1679 = vpow2.f32 %v1246_v49  ;;  %1270 = vadd.xlane.f32.xlu0 %v2022_v50 }
 0x39c   : > { %v2026_v51 = vpop.eup %1673 }
 0x39d   : > { %v2028_v52 = vpop.eup %1675  ;;  %1276 = vadd.xlane.f32.xlu1 %v2026_v51 }
 0x39e   : > { %1274 = vadd.xlane.f32.xlu0 %v2028_v52 }
 0x3a1   : > { %v1205_v53 = vpop.xlane.xlu1 %1204 }
 0x3a2   : > { %v1227_v54 = vsub.f32 %v1990_v8, %v1205_v53 }
 0x3a3   : > { %v1203_v55 = vpop.xlane.xlu0 %1202 }
 0x3a4   : > { %v1252_v56 = vmul.f32 1.442695, %v1227_v54  ;;  %v1226_v57 = vsub.f32 %v1992_v10, %v1203_v55 }
 0x3a5   : > { %v2034_v58 = vpop.eup %1677 }
 0x3a6   : > { %1681 = vpow2.f32 %v1252_v56  ;;  %v1250_v59 = vmul.f32 1.442695, %v1226_v57  ;;  %1280 = vadd.xlane.f32.xlu1 %v2034_v58 }
 0x3a7   : > { %v2037_v60 = vpop.eup %1679 }
 0x3a8   : > { %1683 = vpow2.f32 %v1250_v59  ;;  %1278 = vadd.xlane.f32.xlu0 %v2037_v60 }
 0x3ab   : > { %v1209_v61 = vpop.xlane.xlu1 %1208 }
 0x3ac   : > { %v1229_v62 = vsub.f32 %v1996_v12, %v1209_v61 }
 0x3ad   : > { %v1207_v63 = vpop.xlane.xlu0 %1206 }
 0x3ae   : > { %v1256_v0 = vmul.f32 1.442695, %v1229_v62  ;;  %v1228_v1 = vsub.f32 %v1998_v33, %v1207_v63 }
 0x3b0   : > { %1685 = vpow2.f32 %v1256_v0  ;;  %v1254_v2 = vmul.f32 1.442695, %v1228_v1 }
 0x3b2   : > { %1687 = vpow2.f32 %v1254_v2 }
 0x3b3   : > { %v2042_v3 = vpop.eup %1681 }
 0x3b4   : > { %1284 = vadd.xlane.f32.xlu1 %v2042_v3 }
 0x3b5   : > { %v2045_v4 = vpop.eup %1683 }
 0x3b6   : > { %1282 = vadd.xlane.f32.xlu0 %v2045_v4 }
 0x3b9   : > { %v1213_v5 = vpop.xlane.xlu1 %1212 }
 0x3ba   : > { %v1231_v6 = vsub.f32 %v2002_v13, %v1213_v5 }
 0x3bb   : > { %v1211_v7 = vpop.xlane.xlu0 %1210 }
 0x3bc   : > { %v1260_v8 = vmul.f32 1.442695, %v1231_v6  ;;  %v1230_v9 = vsub.f32 %v2004_v15, %v1211_v7 }
 0x3bd   : > { %v2050_v10 = vpop.eup %1685 }
 0x3be   : > { %1689 = vpow2.f32 %v1260_v8  ;;  %v1258_v11 = vmul.f32 1.442695, %v1230_v9  ;;  %1288 = vadd.xlane.f32.xlu1 %v2050_v10 }
 0x3bf   : > { %v2053_v12 = vpop.eup %1687 }
 0x3c0   : > { %1691 = vpow2.f32 %v1258_v11  ;;  %1286 = vadd.xlane.f32.xlu0 %v2053_v12 }
 0x3c3   : > { %v1217_v29 = vpop.xlane.xlu1 %1216 }
 0x3c4   : > { %v1233_v33 = vsub.f32 %v2008_v17, %v1217_v29 }
 0x3c5   : > { %v1215_v28 = vpop.xlane.xlu0 %1214 }
 0x3c6   : > { %v1264_v13 = vmul.f32 1.442695, %v1233_v33  ;;  %v1232_v14 = vsub.f32 %v2010_v19, %v1215_v28 }
 0x3c8   : > { %1693 = vpow2.f32 %v1264_v13  ;;  %v1262_v15 = vmul.f32 1.442695, %v1232_v14 }
 0x3ca   : > { %1695 = vpow2.f32 %v1262_v15 }
 0x3cb   : > { %v2058_v16 = vpop.eup %1689 }
 0x3cc   : > { %1292 = vadd.xlane.f32.xlu1 %v2058_v16 }
 0x3cd   : > { %v2061_v18 = vpop.eup %1691 }
 0x3ce   : > { %1290 = vadd.xlane.f32.xlu0 %v2061_v18 }
 0x3d5   : > { %v2064_v20 = vpop.eup %1693 }
 0x3d6   : > { %1296 = vadd.xlane.f32.xlu1 %v2064_v20 }
 0x3d7   : > { %v2067_v17 = vpop.eup %1695 }
 0x3d8   : > { %1294 = vadd.xlane.f32.xlu0 %v2067_v17 }
 0x41c   : > { %v1269_v19 = vpop.xlane.xlu1 %1268 }
 0x41d   : > { %1697 = vrcp.f32 %v1269_v19 }
 0x41e   : > { %v1267_v21 = vpop.xlane.xlu0 %1266 }
 0x41f   : > { %1699 = vrcp.f32 %v1267_v21 }
 0x422   : > { %v1273_v22 = vpop.xlane.xlu1 %1272 }
 0x423   : > { %1701 = vrcp.f32 %v1273_v22  ;;  %v1271_v23 = vpop.xlane.xlu0 %1270 }
 0x424   : > { %1703 = vrcp.f32 %v1271_v23 }
 0x426   : > { %v1277_v24 = vpop.xlane.xlu1 %1276 }
 0x427   : > { %1705 = vrcp.f32 %v1277_v24  ;;  %v1275_v25 = vpop.xlane.xlu0 %1274 }
 0x428   : > { %1707 = vrcp.f32 %v1275_v25 }
 0x42a   : > { %v1698_v27 = vpop.eup %1697 }
 0x42b   : > { %v1301_v30 = vmul.f32 %v1698_v27, %v2014_v42 }
 0x42c   : > { %v1700_v31 = vpop.eup %1699 }
 0x42d   : > { %1332 = vst.msk [vmem:[%s2075_s29 + $0x8] sm:$0xff] %vm1330_vm1, %v1301_v30  ;;  %v1299_v32 = vmul.f32 %v1700_v31, %v2017_v44 }
 0x42f   : > { %1331 = vst.msk [vmem:[%s2075_s29] sm:$0xff] %vm1330_vm1, %v1299_v32  ;;  %v1281_v34 = vpop.xlane.xlu1 %1280 }
 0x430   : > { %v1702_v35 = vpop.eup %1701  ;;  %1709 = vrcp.f32 %v1281_v34 }
 0x431   : > { %v1704_v36 = vpop.eup %1703  ;;  %v1305_v37 = vmul.f32 %v1702_v35, %v2020_v48  ;;  %v1279_v38 = vpop.xlane.xlu0 %1278 }
 0x432   : > { %v1303_v39 = vmul.f32 %v1704_v36, %v2022_v50  ;;  %1711 = vrcp.f32 %v1279_v38 }
 0x433   : > { %1334 = vst.msk [vmem:[%s2075_s29 + $0x18] sm:$0xff] %vm1330_vm1, %v1305_v37 }
 0x434   : > { %v1706_v40 = vpop.eup %1705  ;;  %1333 = vst.msk [vmem:[%s2075_s29 + $0x10] sm:$0xff] %vm1330_vm1, %v1303_v39 }
 0x435   : > { %v1708_v41 = vpop.eup %1707  ;;  %v1309_v42 = vmul.f32 %v1706_v40, %v2026_v51 }
 0x436   : > { %v1307_v43 = vmul.f32 %v1708_v41, %v2028_v52 }
 0x437   : > { %1336 = vst.msk [vmem:[%s2075_s29 + $0x28] sm:$0xff] %vm1330_vm1, %v1309_v42 }
 0x438   : > { %1335 = vst.msk [vmem:[%s2075_s29 + $0x20] sm:$0xff] %vm1330_vm1, %v1307_v43 }
 0x43d   : > { %v1710_v44 = vpop.eup %1709  ;;  %v1285_v26 = vpop.xlane.xlu1 %1284 }
 0x43e   : > { %v1313_v45 = vmul.f32 %v1710_v44, %v2034_v58  ;;  %1713 = vrcp.f32 %v1285_v26 }
 0x43f   : > { %v1712_v46 = vpop.eup %1711  ;;  %v1283_v47 = vpop.xlane.xlu0 %1282 }
 0x440   : > { %1338 = vst.msk [vmem:[%s2075_s29 + $0x38] sm:$0xff] %vm1330_vm1, %v1313_v45  ;;  %v1311_v48 = vmul.f32 %v1712_v46, %v2037_v60  ;;  %1715 = vrcp.f32 %v1283_v47 }
 0x442   : > { %1337 = vst.msk [vmem:[%s2075_s29 + $0x30] sm:$0xff] %vm1330_vm1, %v1311_v48 }
 0x447   : > { %v1289_v49 = vpop.xlane.xlu1 %1288 }
 0x448   : > { %1717 = vrcp.f32 %v1289_v49 }
 0x449   : > { %v1287_v50 = vpop.xlane.xlu0 %1286 }
 0x44a   : > { %1719 = vrcp.f32 %v1287_v50 }
 0x44b   : > { %v1714_v51 = vpop.eup %1713 }
 0x44c   : > { %v1317_v52 = vmul.f32 %v1714_v51, %v2042_v3 }
 0x44d   : > { %v1716_v53 = vpop.eup %1715 }
 0x44e   : > { %1340 = vst.msk [vmem:[%s2075_s29 + $0x48] sm:$0xff] %vm1330_vm1, %v1317_v52  ;;  %v1315_v54 = vmul.f32 %v1716_v53, %v2045_v4 }
 0x450   : > { %1339 = vst.msk [vmem:[%s2075_s29 + $0x40] sm:$0xff] %vm1330_vm1, %v1315_v54 }
 0x455   : > { %v1718_v55 = vpop.eup %1717  ;;  %v1293_v56 = vpop.xlane.xlu1 %1292 }
 0x456   : > { %v1321_v57 = vmul.f32 %v1718_v55, %v2050_v10  ;;  %1721 = vrcp.f32 %v1293_v56 }
 0x457   : > { %v1720_v58 = vpop.eup %1719  ;;  %v1291_v59 = vpop.xlane.xlu0 %1290 }
 0x458   : > { %1342 = vst.msk [vmem:[%s2075_s29 + $0x58] sm:$0xff] %vm1330_vm1, %v1321_v57  ;;  %v1319_v60 = vmul.f32 %v1720_v58, %v2053_v12  ;;  %1723 = vrcp.f32 %v1291_v59 }
 0x45a   : > { %1341 = vst.msk [vmem:[%s2075_s29 + $0x50] sm:$0xff] %vm1330_vm1, %v1319_v60 }
 0x45f   : > { %v1297_v61 = vpop.xlane.xlu1 %1296 }
 0x460   : > { %1725 = vrcp.f32 %v1297_v61 }
 0x461   : > { %v1295_v62 = vpop.xlane.xlu0 %1294 }
 0x462   : > { %1727 = vrcp.f32 %v1295_v62 }
 0x463   : > { %v1722_v63 = vpop.eup %1721 }
 0x464   : > { %v1325_v0 = vmul.f32 %v1722_v63, %v2058_v16 }
 0x465   : > { %v1724_v1 = vpop.eup %1723 }
 0x466   : > { %1344 = vst.msk [vmem:[%s2075_s29 + $0x68] sm:$0xff] %vm1330_vm1, %v1325_v0  ;;  %v1323_v2 = vmul.f32 %v1724_v1, %v2061_v18 }
 0x468   : > { %1343 = vst.msk [vmem:[%s2075_s29 + $0x60] sm:$0xff] %vm1330_vm1, %v1323_v2 }
 0x46d   : > { %v1726_v3 = vpop.eup %1725 }
 0x46e   : > { %v1329_v4 = vmul.f32 %v1726_v3, %v2064_v20 }
 0x46f   : > { %v1728_v5 = vpop.eup %1727 }
 0x470   : > { %1346 = vst.msk [vmem:[%s2075_s29 + $0x78] sm:$0xff] %vm1330_vm1, %v1329_v4  ;;  %v1327_v6 = vmul.f32 %v1728_v5, %v2067_v17 }
 0x472   : > { %1345 = vst.msk [vmem:[%s2075_s29 + $0x70] sm:$0xff] %vm1330_vm1, %v1327_v6 }
 0x473 PF: > { %s17_s24 = sadd.s32 1, %s1735_s24  }
 0x474   : > { %p14_p4 = scmp.ge.s32.totalorder %s17_s24, 4  }
 0x476   :  { %16 = sbr.rel (!%p14_p4) target bundleno = 1 (0x1), region = 80 }

</bundles_post_ra>
